<compile_context>
chip_gen: v5e
topology: v5e:2x2
jax: 0.10.0
libtpu: 0.0.40
codegen_flags: <defaults>
</compile_context>

<pallas_src>
import functools
import math

import jax
import jax.numpy as jnp
from jax.experimental import pallas as pl
from jax.experimental.pallas import tpu as pltpu


def _center_cropout_kernel(x_ref, x0_ref, o_ref, *, top, bottom, left, right,
                           tile_h):
    # x_ref / x0_ref / o_ref: (tile_nc, tile_h, W) blocks, native dtype.
    # Absolute spatial coordinates of this tile's elements (crop mask only
    # depends on (h, w); it broadcasts across the collapsed N*C axis).
    h_idx = (pl.program_id(1) * tile_h
             + jax.lax.broadcasted_iota(jnp.int32, x_ref.shape, 1))
    w_idx = jax.lax.broadcasted_iota(jnp.int32, x_ref.shape, 2)
    in_crop = ((h_idx >= top) & (h_idx < bottom)
               & (w_idx >= left) & (w_idx < right))
    o_ref[...] = jnp.where(in_crop, x_ref[...], x0_ref[...])


def watermark_center_cropout(x, x0, scale, *,
                             target_block_bytes=2 * 1024 * 1024):
    """x, x0: (N, C, H, W), same shape. Returns the center-cropout combination."""
    assert x.shape == x0.shape, "x and x0 must have the same shape"
    n, c, h, w = x.shape

    # Static (compile-time) crop rectangle.
    side = math.sqrt(float(scale))
    new_h = int(h * side)
    new_w = int(w * side)
    top = (h - new_h) // 2
    left = (w - new_w) // 2
    bottom = top + new_h
    right = left + new_w

    # Collapse (N, C) -> one slab axis: the mask only depends on (h, w).
    nc = n * c
    xf = x.reshape(nc, h, w)
    x0f = x0.reshape(nc, h, w).astype(x.dtype)

    # Pick a block that stays around target_block_bytes per buffer.
    itemsize = jnp.dtype(x.dtype).itemsize
    bytes_per_row = max(w * itemsize, 1)
    target_rows = max(8, target_block_bytes // bytes_per_row)

    if h <= target_rows:
        # Whole image fits: take full H and as many (N*C) slabs as fit.
        tile_h = h                          # full dim is always a legal block dim
        tile_nc = min(nc, max(1, target_rows // h))
    else:
        # Large image: one slab at a time, tile H (multiple of 8 sublanes).
        tile_h = max(8, (target_rows // 8) * 8)
        tile_nc = 1

    grid = (pl.cdiv(nc, tile_nc), pl.cdiv(h, tile_h))
    block = (tile_nc, tile_h, w)            # last dim = full W (lane axis)
    idx_map = lambda i, j: (i, j, 0)

    kernel = functools.partial(
        _center_cropout_kernel,
        top=top, bottom=bottom, left=left, right=right, tile_h=tile_h)

    out = pl.pallas_call(
        kernel,
        out_shape=jax.ShapeDtypeStruct((nc, h, w), x.dtype),
        grid=grid,
        in_specs=[
            pl.BlockSpec(block, idx_map),
            pl.BlockSpec(block, idx_map),
        ],
        out_specs=pl.BlockSpec(block, idx_map),
        compiler_params=pltpu.CompilerParams(
            # Purely elementwise select: every grid step is independent.
            dimension_semantics=("parallel", "parallel")),
    )(xf, x0f)

    return out.reshape(n, c, h, w)


def _reference(x, x0, scale):
    _, _, h, w = x.shape
    side = math.sqrt(float(scale))
    new_h = int(h * side)
    new_w = int(w * side)
    top = (h - new_h) // 2
    left = (w - new_w) // 2
    mask = jnp.zeros((1, 1, h, w), dtype=bool)
    mask = mask.at[:, :, top:top + new_h, left:left + new_w].set(True)
    return jnp.where(mask, x, x0.astype(x.dtype))


if __name__ == "__main__":
    key = jax.random.PRNGKey(0)
    k1, k2 = jax.random.split(key)

    n, c, h, w = 2, 3, 16, 16
    scale = 0.5                      # module parameter (deterministic)

    x = jax.random.uniform(k1, (n, c, h, w), dtype=jnp.float32)   # watermarked
    x0 = jax.random.uniform(k2, (n, c, h, w), dtype=jnp.float32)  # original

    out = watermark_center_cropout(x, x0, scale)
    out = jax.block_until_ready(out)

    ref = _reference(x, x0, scale)
    assert out.shape == x.shape and out.dtype == x.dtype
    assert jnp.array_equal(out, ref)

    print("KERNEL_OK")
</pallas_src>

<mosaic_0001>
module attributes {stable_mosaic.version = 11 : i64} {
  func.func @_center_cropout_kernel(%arg0: i32, %arg1: i32, %arg2: memref<6x16x16xf32, #tpu.memory_space<vmem>>, %arg3: memref<6x16x16xf32, #tpu.memory_space<vmem>>, %arg4: memref<6x16x16xf32, #tpu.memory_space<vmem>>) attributes {dimension_semantics = [#tpu.dimension_semantics<parallel>, #tpu.dimension_semantics<parallel>], iteration_bounds = array<i64: 1, 1>, scalar_prefetch = 0 : i64, scratch_operands = 0 : i64, tpu.core_type = #tpu.core_type<tc>, window_params = [{transform_indices = @transform_0, window_bounds = array<i64: 6, 16, 16>}, {transform_indices = @transform_1, window_bounds = array<i64: 6, 16, 16>}, {transform_indices = @transform_2, window_bounds = array<i64: 6, 16, 16>}]} {
    %c16_i32 = arith.constant 16 : i32
    %0 = arith.muli %arg1, %c16_i32 : i32
    %1 = tpu.iota {dimensions = array<i32: 1>} : vector<6x16x16xi32>
    %2 = vector.broadcast %0 : i32 to vector<6x16x16xi32>
    %3 = arith.addi %2, %1 : vector<6x16x16xi32>
    %4 = tpu.iota {dimensions = array<i32: 2>} : vector<6x16x16xi32>
    %c2_i32 = arith.constant 2 : i32
    %5 = vector.broadcast %c2_i32 : i32 to vector<6x16x16xi32>
    %6 = arith.cmpi sge, %3, %5 : vector<6x16x16xi32>
    %c13_i32 = arith.constant 13 : i32
    %7 = vector.broadcast %c13_i32 : i32 to vector<6x16x16xi32>
    %8 = arith.cmpi slt, %3, %7 : vector<6x16x16xi32>
    %9 = arith.andi %6, %8 : vector<6x16x16xi1>
    %c2_i32_0 = arith.constant 2 : i32
    %10 = vector.broadcast %c2_i32_0 : i32 to vector<6x16x16xi32>
    %11 = arith.cmpi sge, %4, %10 : vector<6x16x16xi32>
    %12 = arith.andi %9, %11 : vector<6x16x16xi1>
    %c13_i32_1 = arith.constant 13 : i32
    %13 = vector.broadcast %c13_i32_1 : i32 to vector<6x16x16xi32>
    %14 = arith.cmpi slt, %4, %13 : vector<6x16x16xi32>
    %15 = arith.andi %12, %14 : vector<6x16x16xi1>
    %c0 = arith.constant 0 : index
    %c0_2 = arith.constant 0 : index
    %c0_3 = arith.constant 0 : index
    %16 = vector.load %arg2[%c0, %c0_2, %c0_3] : memref<6x16x16xf32, #tpu.memory_space<vmem>>, vector<6x16x16xf32>
    %c0_4 = arith.constant 0 : index
    %c0_5 = arith.constant 0 : index
    %c0_6 = arith.constant 0 : index
    %17 = vector.load %arg3[%c0_4, %c0_5, %c0_6] : memref<6x16x16xf32, #tpu.memory_space<vmem>>, vector<6x16x16xf32>
    %18 = arith.select %15, %16, %17 : vector<6x16x16xi1>, vector<6x16x16xf32>
    %c0_7 = arith.constant 0 : index
    %c0_8 = arith.constant 0 : index
    %c0_9 = arith.constant 0 : index
    %19 = vector.load %arg4[%c0_7, %c0_8, %c0_9] : memref<6x16x16xf32, #tpu.memory_space<vmem>>, vector<6x16x16xf32>
    tpu.vector_store %arg4[%c0_7, %c0_8, %c0_9], %18 {strides = array<i32>} : memref<6x16x16xf32, #tpu.memory_space<vmem>>, vector<6x16x16xf32>,
    return
  }
  func.func @transform_0(%arg0: i32, %arg1: i32) -> (i32, i32, i32) {
    %c0_i32 = arith.constant 0 : i32
    %c0_i32_0 = arith.constant 0 : i32
    return %arg0, %arg1, %c0_i32 : i32, i32, i32
  }
  func.func @transform_1(%arg0: i32, %arg1: i32) -> (i32, i32, i32) {
    %c0_i32 = arith.constant 0 : i32
    %c0_i32_0 = arith.constant 0 : i32
    return %arg0, %arg1, %c0_i32 : i32, i32, i32
  }
  func.func @transform_2(%arg0: i32, %arg1: i32) -> (i32, i32, i32) {
    %c0_i32 = arith.constant 0 : i32
    %c0_i32_0 = arith.constant 0 : i32
    return %arg0, %arg1, %c0_i32 : i32, i32, i32
  }
}

</mosaic_0001>

<bundles_post_ra>
// kernel: tpu_custom_call.1
= control target key start
LH: loop header
LB: loop body
LE: loop exit
PB: predicated region body
PF: predicated region fallthrough
CT: control target
= control target key end

     0   :  { %7 = vsyncpa [#allocation3], 0  ;;  %s299_s0 = inlined_call_operand.hbm [shape: f32[6,16,16], index: 0, kind: input, shape index: {}]   ;;  %s300_s1 = inlined_call_operand.hbm [shape: f32[6,16,16], index: 1, kind: input, shape index: {}]   ;;  %s301_s2 = inlined_call_operand.hbm [shape: f32[6,16,16], index: 2, kind: output, shape index: {}]  }
   0x1   :  { %8 = vsyncpa [#allocation6], 0 }
   0x2   :  { %9 = vsyncpa [#allocation4], 0  ;;  %s14_s11 = sshll.u32 %s299_s0, 4  ;;  %s217_s12 = smov [#allocation2]   ;;  %s15_s11 = int_to_ptr.hbm [resolvable:$true] %s14_s11 }
   0x3   :  { %s16_s13 = sshll.u32 %s217_s12, 4  ;;  %s27_s16 = sshll.u32 %s300_s1, 4  ;;  %s17_s13 = int_to_ptr.vmem [resolvable:$true] %s16_s13  ;;  %s28_s16 = int_to_ptr.hbm [resolvable:$true] %s27_s16 }
   0x4   :  { %s218_s17 = smov 128   ;;  %s219_s18 = smov 8  }
   0x5   :  { %22 = dma.hbm_to_vmem [thread:$0]  %s15_s11, 1536, %s17_s13, [#allocation3], %s218_s17, %s218_s17, %s219_s18  }
   0x6   :  { %s220_s19 = smov [#allocation5]  }
   0x7   :  { %s29_s20 = sshll.u32 %s220_s19, 4  ;;  %s30_s20 = int_to_ptr.vmem [resolvable:$true] %s29_s20 }
   0x8   :  { %35 = dma.hbm_to_vmem [thread:$0]  %s28_s16, 1536, %s30_s20, [#allocation6], %s218_s17, %s218_s17, %s219_s18  }
   0x9   :  { %211 = dma.done.wait [#allocation3], 1536  }
   0xa   :  { %212 = vsyncadd [#allocation3], 4294965760 }
   0xb   :  { %213 = dma.done.wait [#allocation6], 1536  }
   0xc   :  { %214 = vsyncadd [#allocation6], 4294965760  ;;  %v45_v0 = vlaneseq  ;;  %vm101_vm5 = vcmask 130048   ;;  %v65_v5 = vld [vmem:[#allocation2] sm:$0xff]  ;;  %v66_v9 = vld [vmem:[#allocation2 + $0x8] sm:$0xff]  ;;  %s221_s0 = smov [#allocation7]  }
   0xd   :  { %v77_v6 = vld [vmem:[#allocation5] sm:$0xff]  ;;  %v78_v10 = vld [vmem:[#allocation5 + $0x8] sm:$0xff]  ;;  %v67_v12 = vld [vmem:[#allocation2 + $0x10] sm:$0xff]  ;;  %s118_s1 = sshll.u32 %s221_s0, 4  ;;  %s120_s23 = sshll.u32 %s301_s2, 4  ;;  %s119_s1 = int_to_ptr.vmem [resolvable:$true] %s118_s1  ;;  %s121_s23 = int_to_ptr.hbm [resolvable:$true] %s120_s23 }
   0xe   :  { %v46_v1 = vshrl.u32 %v45_v0, 7  ;;  %v52_v2 = vand.u32 127, %v45_v0  ;;  %v79_v13 = vld [vmem:[#allocation5 + $0x10] sm:$0xff]  ;;  %v68_v14 = vld [vmem:[#allocation2 + $0x18] sm:$0xff]  ;;  %v69_v17 = vld [vmem:[#allocation2 + $0x20] sm:$0xff] }
   0xf   :  { %v80_v16 = vld [vmem:[#allocation5 + $0x18] sm:$0xff]  ;;  %v81_v18 = vld [vmem:[#allocation5 + $0x20] sm:$0xff]  ;;  %v70_v21 = vld [vmem:[#allocation2 + $0x28] sm:$0xff] }
  0x10   :  { %vm53_vm0 = vcmp.ge.s32.totalorder %v46_v1, 2  ;;  %vm59_vm1 = vcmp.ge.s32.totalorder %v52_v2, 2  ;;  %vm62_vm2 = vcmp.lt.s32.totalorder %v52_v2, 13  ;;  %v47_v3 = vadd.s32 8, %v46_v1  ;;  %v82_v22 = vld [vmem:[#allocation5 + $0x28] sm:$0xff]  ;;  %v71_v23 = vld [vmem:[#allocation2 + $0x30] sm:$0xff] }
  0x11   :  { %vm60_vm3 = vmand %vm53_vm0, %vm59_vm1  ;;  %v83_v25 = vld [vmem:[#allocation5 + $0x30] sm:$0xff]  ;;  %v72_v26 = vld [vmem:[#allocation2 + $0x38] sm:$0xff] }
  0x12   :  { %vm249_vm4 = vmand %vm60_vm3, %vm62_vm2  ;;  %vm56_vm6 = vcmp.lt.s32.totalorder %v47_v3, 13  ;;  %v84_v27 = vld [vmem:[#allocation5 + $0x38] sm:$0xff]  ;;  %v73_v30 = vld [vmem:[#allocation2 + $0x40] sm:$0xff] }
  0x13   :  { %vm61_vm7 = vmand %vm56_vm6, %vm59_vm1  ;;  %v89_v7 = vsel %vm249_vm4, %v65_v5, %v77_v6  ;;  %v91_v15 = vsel %vm249_vm4, %v67_v12, %v79_v13  ;;  %v93_v20 = vsel %vm249_vm4, %v69_v17, %v81_v18  ;;  %v95_v28 = vsel %vm249_vm4, %v71_v23, %v83_v25  ;;  %v85_v31 = vld [vmem:[#allocation5 + $0x40] sm:$0xff]  ;;  %v74_v32 = vld [vmem:[#allocation2 + $0x48] sm:$0xff] }
  0x14   :  { %vm255_vm8 = vmand %vm61_vm7, %vm62_vm2  ;;  %102 = vst.msk [vmem:[#allocation7] sm:$0xff] %vm101_vm5, %v89_v7  ;;  %v97_v33 = vsel %vm249_vm4, %v73_v30, %v85_v31  ;;  %v86_v34 = vld [vmem:[#allocation5 + $0x48] sm:$0xff]  ;;  %v75_v35 = vld [vmem:[#allocation2 + $0x50] sm:$0xff] }
  0x15   :  { %v90_v11 = vsel %vm255_vm8, %v66_v9, %v78_v10  ;;  %104 = vst.msk [vmem:[#allocation7 + $0x10] sm:$0xff] %vm101_vm5, %v91_v15  ;;  %v92_v19 = vsel %vm255_vm8, %v68_v14, %v80_v16  ;;  %v94_v24 = vsel %vm255_vm8, %v70_v21, %v82_v22  ;;  %v96_v29 = vsel %vm255_vm8, %v72_v26, %v84_v27  ;;  %v87_v36 = vld [vmem:[#allocation5 + $0x50] sm:$0xff]  ;;  %v76_v38 = vld [vmem:[#allocation2 + $0x58] sm:$0xff] }
  0x16   :  { %103 = vst.msk [vmem:[#allocation7 + $0x8] sm:$0xff] %vm101_vm5, %v90_v11  ;;  %v98_v37 = vsel %vm255_vm8, %v74_v32, %v86_v34  ;;  %v88_v39 = vld [vmem:[#allocation5 + $0x58] sm:$0xff]  ;;  %v99_v40 = vsel %vm249_vm4, %v75_v35, %v87_v36 }
  0x17   :  { %105 = vst.msk [vmem:[#allocation7 + $0x18] sm:$0xff] %vm101_vm5, %v92_v19  ;;  %v100_v41 = vsel %vm255_vm8, %v76_v38, %v88_v39 }
  0x18   :  { %106 = vst.msk [vmem:[#allocation7 + $0x20] sm:$0xff] %vm101_vm5, %v93_v20 }
  0x19   :  { %107 = vst.msk [vmem:[#allocation7 + $0x28] sm:$0xff] %vm101_vm5, %v94_v24 }
  0x1a   :  { %108 = vst.msk [vmem:[#allocation7 + $0x30] sm:$0xff] %vm101_vm5, %v95_v28 }
  0x1b   :  { %109 = vst.msk [vmem:[#allocation7 + $0x38] sm:$0xff] %vm101_vm5, %v96_v29 }
  0x1c   :  { %110 = vst.msk [vmem:[#allocation7 + $0x40] sm:$0xff] %vm101_vm5, %v97_v33 }
  0x1d   :  { %111 = vst.msk [vmem:[#allocation7 + $0x48] sm:$0xff] %vm101_vm5, %v98_v37 }
  0x1e   :  { %112 = vst.msk [vmem:[#allocation7 + $0x50] sm:$0xff] %vm101_vm5, %v99_v40 }
  0x1f   :  { %113 = vst.msk [vmem:[#allocation7 + $0x58] sm:$0xff] %vm101_vm5, %v100_v41 }
  0x20   :  { %126 = dma.vmem_to_hbm [thread:$0]  %s119_s1, 1536, %s121_s23, [#allocation4], %s218_s17, %s218_s17, %s219_s18  }
  0x21   :  { %215 = dma.done.wait [#allocation4], 1536  }
  0x22   :  { %216 = vsyncadd [#allocation4], 4294965760 }
  0x23   :  { %131 = vsyncpa [#allocation3], 1 }
  0x24   :  { %132 = vsyncpa [#allocation6], 1 }
  0x25   :  { %133 = vsyncpa [#allocation4], 1 }

</bundles_post_ra>
